<compile_context>
chip_gen: v7x
topology: tpu7x:2x2x1
jax: 0.10.0
libtpu: 0.0.40
codegen_flags: <defaults>
</compile_context>

<pallas_src>
import jax
import jax.numpy as jnp
import numpy as np
from jax.experimental import pallas as pl
from jax.experimental.pallas import tpu as pltpu

_MiB = 1024 * 1024


def _round_up(x, m):
    return -(-x // m) * m


def _round_down_mult(x, m):
    return (x // m) * m


# ---------------------------------------------------------------------------
# Kernels
# ---------------------------------------------------------------------------
def _softmax_and_context(scores, enc, ctx_ref, wts_ref):
    """scores: (BB, S) f32, enc: (BB, S, H) f32."""
    m = jnp.max(scores, axis=-1, keepdims=True)
    e = jnp.exp(scores - m)
    denom = jnp.sum(e, axis=-1, keepdims=True)
    # EUP vrcp + one Newton step: moves the divide off the VPU slot while
    # staying ~1e-7 accurate.
    r = pl.reciprocal(denom, approx=True)
    r = r * (2.0 - denom * r)
    attn = e * r                                           # (BB, S)
    # ctx[b, h] = sum_s attn[b, s] * enc[b, s, h]  (VPU mul + sublane reduce)
    ctx = jnp.sum(attn[:, :, None] * enc, axis=1)          # (BB, H)
    ctx_ref[...] = ctx.astype(ctx_ref.dtype)
    wts_ref[...] = attn.astype(wts_ref.dtype)


def _dot_attn_kernel(q_ref, enc_ref, ctx_ref, wts_ref):
    """method='dot' and (after the wrapper-side fold) method='general'."""
    q = q_ref[...].astype(jnp.float32)                     # (BB, H)
    enc = enc_ref[...].astype(jnp.float32)                 # (BB, S, H)
    # scores[b, s] = sum_h q[b, h] * enc[b, s, h]  (VPU mul + lane reduce)
    scores = jnp.sum(q[:, None, :] * enc, axis=-1)         # (BB, S)
    _softmax_and_context(scores, enc, ctx_ref, wts_ref)


def _concat_attn_kernel(hwb_ref, enc_ref, wet_ref, other_ref, ctx_ref, wts_ref):
    """method='concat': energy = tanh(enc @ We^T + (ht @ Wh^T + b))."""
    bb, s, h = enc_ref.shape
    enc = enc_ref[...].astype(jnp.float32)                 # (BB, S, H)
    # single well-shaped (BB*S, H) x (H, H) MXU matmul, weight pre-transposed
    proj = jnp.dot(enc.reshape(bb * s, h),
                   wet_ref[...].astype(jnp.float32),
                   preferred_element_type=jnp.float32).reshape(bb, s, h)
    hwb = hwb_ref[...].astype(jnp.float32)                 # (BB, H) = ht@Wh^T + b
    energy = jnp.tanh(proj + hwb[:, None, :])              # (BB, S, H)
    other = other_ref[...].astype(jnp.float32).reshape(1, 1, h)
    scores = jnp.sum(other * energy, axis=-1)              # (BB, S)
    _softmax_and_context(scores, enc, ctx_ref, wts_ref)


# ---------------------------------------------------------------------------
# VMEM budgeting / adaptive batch tile
# ---------------------------------------------------------------------------
def _vmem_cap_bytes():
    """Per-generation scoped-VMEM cap (conservative on v7x's 64 MiB)."""
    try:
        phys = int(pltpu.get_tpu_info().vmem_capacity_bytes)
    except Exception:
        phys = 64 * _MiB  # assume the smallest (v7x) if the query fails
    if phys >= 128 * _MiB:
        return 96 * _MiB          # v5e / v6e (128 MiB physical)
    return 36 * _MiB              # v7x (64 MiB physical)


def _block_cost(S, H, method, enc_itemsize, q_itemsize):
    """(per-batch-row bytes, fixed bytes) of VMEM usage, incl. lane padding."""
    Hpad = _round_up(H, 128)      # lane-dim padding of f32 VMEM tiles
    Ssub = _round_up(S, 8)        # sublane-dim padding
    Slane = _round_up(S, 128)     # when S is the last (lane) dim
    n_big_temps = 3 if method in ("dot", "general") else 5   # f32 (BB,S,H) temps
    per_row = (
        2 * Ssub * Hpad * enc_itemsize     # double-buffered enc input block
        + n_big_temps * Ssub * Hpad * 4    # in-kernel f32 (BB,S,H) temporaries
        + 2 * Hpad * q_itemsize            # double-buffered q / hwb block
        + 2 * Hpad * 4                     # double-buffered ctx output block
        + 2 * Slane * 4                    # double-buffered wts output block
        + 4 * Slane * 4                    # (BB,S) f32 softmax temporaries
    )
    fixed = 0
    if method == "concat":
        fixed += 2 * _round_up(H, 8) * Hpad * 4   # WeT (double-buffered)
        fixed += 2 * 8 * Hpad * 4                 # other (double-buffered)
    return per_row, fixed


def _choose_bb(B, S, H, method, enc_itemsize, q_itemsize, vmem_cap, block_b):
    per_row, fixed = _block_cost(S, H, method, enc_itemsize, q_itemsize)
    if block_b is not None:
        bb = max(8, _round_down_mult(int(block_b), 8))
    else:
        budget = vmem_cap - 4 * _MiB - fixed      # headroom for compiler scratch
        bb = max(8, _round_down_mult(max(budget, 0) // per_row, 8))
    bb = min(bb, _round_up(B, 8))
    # Keep >= 2 grid steps when the batch allows it (v7x: 2 TCs share the grid;
    # everywhere: preserves double-buffer overlap).
    if B > 8 and pl.cdiv(B, bb) < 2:
        bb = max(8, _round_up(-(-B // 2), 8))
    est = bb * per_row + fixed
    return bb, est


# ---------------------------------------------------------------------------
# Wrapper
# ---------------------------------------------------------------------------
def global_attention(method, ht, enc_outputs, params, block_b=None,
                     storage_dtype=None):
    """Pallas implementation of GlobalAttention.forward.

    ht: (1, B, H), enc_outputs: (B, S, H)
    returns (context (B, 1, H), attn_weights (B, 1, S))
    """
    if method not in ("dot", "general", "concat"):
        raise ValueError(method, "is not an appropriate attention method.")
    B, S, H = enc_outputs.shape
    ht_b = jnp.transpose(ht, (1, 0, 2)).reshape(B, H)      # (B, H)

    if method in ("dot", "general"):
        if method == "dot":
            q = ht_b
        else:
            # softmax over seq is shift-invariant, so the ht·b constant drops
            # and the HxH matmul happens once here (not per seq position).
            q = ht_b @ params["attn_w"]                    # (B, H)
        extra_inputs, extra_specs = [], []
        kernel = _dot_attn_kernel
    else:  # concat
        W = params["attn_w"]                               # (H, 2H)
        Wh, We = W[:, :H], W[:, H:]
        WeT = jnp.asarray(We.T)                            # (H, H), pre-transposed
        q = ht_b @ Wh.T + params["attn_b"][None, :]        # (B, H), hoisted matmul
        extra_inputs = [WeT, params["other"].reshape(1, H)]
        extra_specs = [pl.BlockSpec((H, H), lambda b: (0, 0)),
                       pl.BlockSpec((1, H), lambda b: (0, 0))]
        kernel = _concat_attn_kernel

    enc = enc_outputs
    if storage_dtype is not None:
        enc = enc.astype(storage_dtype)
        q = q.astype(storage_dtype)

    vmem_cap = _vmem_cap_bytes()
    BB, est_bytes = _choose_bb(B, S, H, method,
                               jnp.dtype(enc.dtype).itemsize,
                               jnp.dtype(q.dtype).itemsize,
                               vmem_cap, block_b)

    # Raise scoped VMEM only when needed; never above the per-generation cap.
    vmem_limit = None
    if est_bytes > 12 * _MiB:
        vmem_limit = int(min(vmem_cap, est_bytes + 4 * _MiB))

    grid = (pl.cdiv(B, BB),)                               # ragged last block OK
    in_specs = [pl.BlockSpec((BB, H), lambda b: (b, 0)),
                pl.BlockSpec((BB, S, H), lambda b: (b, 0, 0))] + extra_specs
    out_specs = [pl.BlockSpec((BB, H), lambda b: (b, 0)),
                 pl.BlockSpec((BB, S), lambda b: (b, 0))]
    out_shape = (jax.ShapeDtypeStruct((B, H), jnp.float32),
                 jax.ShapeDtypeStruct((B, S), jnp.float32))

    ctx2d, wts2d = pl.pallas_call(
        kernel,
        out_shape=out_shape,
        grid_spec=pltpu.PrefetchScalarGridSpec(
            num_scalar_prefetch=0,
            grid=grid,
            in_specs=in_specs,
            out_specs=out_specs,
        ),
        compiler_params=pltpu.CompilerParams(
            dimension_semantics=("parallel",),
            vmem_limit_bytes=vmem_limit,
        ),
    )(q, enc, *extra_inputs)

    context = ctx2d.reshape(B, 1, H)
    attn_weights = wts2d.reshape(B, 1, S)
    return context, attn_weights


# ---------------------------------------------------------------------------
# Pure-JAX reference (matches PyTorch forward semantics)
# ---------------------------------------------------------------------------
def ref_global_attention(method, ht, enc, params):
    htb = jnp.transpose(ht, (1, 0, 2))                     # (B, 1, H)
    if method == "dot":
        energy = jnp.sum(htb * enc, axis=2)
    elif method == "general":
        e = enc @ params["attn_w"].T + params["attn_b"]
        energy = jnp.sum(htb * e, axis=2)
    else:
        # TODO(synk): PyTorch's expand(enc.size(0), -1, -1) keeps seq dim = 1
        # (latent shape bug that errors for S>1); we implement the intended
        # broadcast over seq_len.
        cat = jnp.concatenate([jnp.broadcast_to(htb, enc.shape), enc], axis=2)
        e = jnp.tanh(cat @ params["attn_w"].T + params["attn_b"])
        energy = jnp.sum(params["other"] * e, axis=2)
    aw = jax.nn.softmax(energy, axis=1)[:, None, :]        # (B, 1, S)
    ctx = aw @ enc                                         # (B, 1, H)
    return ctx, aw


def _make_params(key, H):
    k_w1, k_b1, k_w2, k_b2, k_other = jax.random.split(key, 5)
    return {
        "dot": {},
        "general": {
            "attn_w": 0.1 * jax.random.normal(k_w1, (H, H), dtype=jnp.float32),
            "attn_b": 0.1 * jax.random.normal(k_b1, (H,), dtype=jnp.float32),
        },
        "concat": {
            "attn_w": 0.1 * jax.random.normal(k_w2, (H, 2 * H), dtype=jnp.float32),
            "attn_b": 0.1 * jax.random.normal(k_b2, (H,), dtype=jnp.float32),
            "other": jax.random.normal(k_other, (1, H), dtype=jnp.float32),
        },
    }


if __name__ == "__main__":
    S, H = 8, 32
    key = jax.random.PRNGKey(0)
    k_data, k_params = jax.random.split(key)
    params = _make_params(k_params, H)

    ok = True
    # B=2 (single ragged grid step) and B=10 (2 grid steps, ragged last block)
    for B in (2, 10):
        k_ht, k_enc = jax.random.split(jax.random.fold_in(k_data, B))
        ht = jax.random.normal(k_ht, (1, B, H), dtype=jnp.float32)
        enc_outputs = jax.random.normal(k_enc, (B, S, H), dtype=jnp.float32)
        for method in ("dot", "general", "concat"):
            ctx, wts = global_attention(method, ht, enc_outputs, params[method])
            jax.block_until_ready((ctx, wts))
            ctx_r, wts_r = ref_global_attention(method, ht, enc_outputs,
                                                params[method])
            ok &= np.allclose(np.asarray(ctx), np.asarray(ctx_r),
                              rtol=1e-5, atol=1e-5)
            ok &= np.allclose(np.asarray(wts), np.asarray(wts_r),
                              rtol=1e-5, atol=1e-5)

    if ok:
        print("KERNEL_OK")
    else:
        raise SystemExit("mismatch vs reference")
</pallas_src>

<mosaic_0001>
module attributes {stable_mosaic.version = 11 : i64} {
  func.func @_dot_attn_kernel(%arg0: i32, %arg1: memref<8x32xf32, #tpu.memory_space<vmem>>, %arg2: memref<8x8x32xf32, #tpu.memory_space<vmem>>, %arg3: memref<8x32xf32, #tpu.memory_space<vmem>>, %arg4: memref<8x8xf32, #tpu.memory_space<vmem>>) attributes {dimension_semantics = [#tpu.dimension_semantics<parallel>], iteration_bounds = array<i64: 1>, scalar_prefetch = 0 : i64, scratch_operands = 0 : i64, tpu.core_type = #tpu.core_type<tc>, window_params = [{transform_indices = @transform_0, window_bounds = array<i64: 8, 32>}, {transform_indices = @transform_1, window_bounds = array<i64: 8, 8, 32>}, {transform_indices = @transform_2, window_bounds = array<i64: 8, 32>}, {transform_indices = @transform_3, window_bounds = array<i64: 8, 8>}]} {
    %c0 = arith.constant 0 : index
    %c0_0 = arith.constant 0 : index
    %0 = vector.load %arg1[%c0, %c0_0] : memref<8x32xf32, #tpu.memory_space<vmem>>, vector<8x32xf32>
    %c0_1 = arith.constant 0 : index
    %c0_2 = arith.constant 0 : index
    %c0_3 = arith.constant 0 : index
    %1 = vector.load %arg2[%c0_1, %c0_2, %c0_3] : memref<8x8x32xf32, #tpu.memory_space<vmem>>, vector<8x8x32xf32>
    %2 = vector.shape_cast %0 : vector<8x32xf32> to vector<8x1x32xf32>
    %3 = vector.broadcast %2 : vector<8x1x32xf32> to vector<8x8x32xf32>
    %4 = arith.mulf %3, %1 : vector<8x8x32xf32>
    %cst = arith.constant dense<0.000000e+00> : vector<8x8xf32>
    %5 = vector.multi_reduction <add>, %4, %cst [2] : vector<8x8x32xf32> to vector<8x8xf32>
    %cst_4 = arith.constant dense<0xFF800000> : vector<8xf32>
    %6 = vector.multi_reduction <maximumf>, %5, %cst_4 [1] : vector<8x8xf32> to vector<8xf32>
    %7 = vector.shape_cast %6 : vector<8xf32> to vector<8x1xf32>
    %8 = vector.broadcast %7 : vector<8x1xf32> to vector<8x8xf32>
    %9 = arith.subf %5, %8 : vector<8x8xf32>
    %10 = math.exp %9 : vector<8x8xf32>
    %cst_5 = arith.constant dense<0.000000e+00> : vector<8xf32>
    %11 = vector.multi_reduction <add>, %10, %cst_5 [1] : vector<8x8xf32> to vector<8xf32>
    %12 = vector.shape_cast %11 : vector<8xf32> to vector<8x1xf32>
    %13 = tpu.reciprocal %12 {approx = true} : vector<8x1xf32> -> vector<8x1xf32>
    %14 = arith.mulf %12, %13 : vector<8x1xf32>
    %cst_6 = arith.constant 2.000000e+00 : f32
    %15 = vector.broadcast %cst_6 : f32 to vector<8x1xf32>
    %16 = arith.subf %15, %14 : vector<8x1xf32>
    %17 = arith.mulf %13, %16 : vector<8x1xf32>
    %18 = vector.broadcast %17 : vector<8x1xf32> to vector<8x8xf32>
    %19 = arith.mulf %10, %18 : vector<8x8xf32>
    %20 = vector.shape_cast %19 : vector<8x8xf32> to vector<8x8x1xf32>
    %21 = vector.broadcast %20 : vector<8x8x1xf32> to vector<8x8x32xf32>
    %22 = arith.mulf %21, %1 : vector<8x8x32xf32>
    %cst_7 = arith.constant dense<0.000000e+00> : vector<8x32xf32>
    %23 = vector.multi_reduction <add>, %22, %cst_7 [1] : vector<8x8x32xf32> to vector<8x32xf32>
    %c0_8 = arith.constant 0 : index
    %c0_9 = arith.constant 0 : index
    %24 = vector.load %arg3[%c0_8, %c0_9] : memref<8x32xf32, #tpu.memory_space<vmem>>, vector<8x32xf32>
    tpu.vector_store %arg3[%c0_8, %c0_9], %23 {strides = array<i32>} : memref<8x32xf32, #tpu.memory_space<vmem>>, vector<8x32xf32>,
    %c0_10 = arith.constant 0 : index
    %c0_11 = arith.constant 0 : index
    %25 = vector.load %arg4[%c0_10, %c0_11] : memref<8x8xf32, #tpu.memory_space<vmem>>, vector<8x8xf32>
    tpu.vector_store %arg4[%c0_10, %c0_11], %19 {strides = array<i32>} : memref<8x8xf32, #tpu.memory_space<vmem>>, vector<8x8xf32>,
    return
  }
  func.func @transform_0(%arg0: i32) -> (i32, i32) {
    %c0_i32 = arith.constant 0 : i32
    %c0_i32_0 = arith.constant 0 : i32
    return %arg0, %c0_i32 : i32, i32
  }
  func.func @transform_1(%arg0: i32) -> (i32, i32, i32) {
    %c0_i32 = arith.constant 0 : i32
    %c0_i32_0 = arith.constant 0 : i32
    %c0_i32_1 = arith.constant 0 : i32
    return %arg0, %c0_i32, %c0_i32_0 : i32, i32, i32
  }
  func.func @transform_2(%arg0: i32) -> (i32, i32) {
    %c0_i32 = arith.constant 0 : i32
    %c0_i32_0 = arith.constant 0 : i32
    return %arg0, %c0_i32 : i32, i32
  }
  func.func @transform_3(%arg0: i32) -> (i32, i32) {
    %c0_i32 = arith.constant 0 : i32
    %c0_i32_0 = arith.constant 0 : i32
    return %arg0, %c0_i32 : i32, i32
  }
}

</mosaic_0001>

<bundles_post_ra>
// kernel: tpu_custom_call.1
= control target key start
LH: loop header
LB: loop body
LE: loop exit
PB: predicated region body
PF: predicated region fallthrough
CT: control target
= control target key end

     0   :  { %9 = vsyncpa [#allocation3], 0  ;;  %s997_s0 = inlined_call_operand.hbm [shape: f32[2,32], index: 0, kind: input, shape index: {}]   ;;  %s998_s1 = inlined_call_operand.hbm [shape: f32[2,8,32], index: 1, kind: input, shape index: {}]   ;;  %s999_s2 = inlined_call_operand.hbm [shape: f32[2,32], index: 2, kind: output, shape index: {0}]   ;;  %s1000_s3 = inlined_call_operand.hbm [shape: f32[2,8], index: 3, kind: output, shape index: {1}]  }
   0x1   :  { %10 = vsyncpa [#allocation6], 0 }
   0x2   :  { %11 = vsyncpa [#allocation4], 0 }
   0x3   :  { %12 = vsyncpa [#allocation9], 0 }
   0x4   :  { %17 = vsyncadd [#allocation3], 96  ;;  %s752_s12 = smov [#allocation2]   ;;  %s656_s16 = scalar_lea.hbm %s997_s0, 32 }
   0x5   :  { %s18_s13 = sshll.u32 %s752_s12, 4  ;;  %p657_p0 = scmp.ne.s32.totalorder %s997_s0, %s656_s16  ;;  %s19_s13 = int_to_ptr.vmem [resolvable:$true] %s18_s13 }
   0x6   :  { %p660_p1 = scmp.lt.u32.totalorder %s656_s16, %s997_s0 }
   0x8   :  { %p662_p2 = pnand %p660_p1, %p657_p0 }
   0xa   :  { %665 = shalt.err (!%p662_p2)
}
   0xb   :  { %s666_s21 = scalar_lea.vmem %s19_s13, 32  ;;  %s670_s22 = scalar_lea.vmem %s19_s13, 128 }
   0xc   :  { %p667_p3 = scmp.ne.s32.totalorder %s19_s13, %s666_s21  ;;  %p671_p4 = scmp.lt.s32.totalorder %s19_s13, %s19_s13 }
   0xd   :  { %p672_p5 = scmp.lt.s32.totalorder %s670_s22, %s666_s21 }
   0xf   :  { %p673_p6 = por %p672_p5, %p671_p4 }
  0x11   :  { %p674_p7 = pnand %p673_p6, %p667_p3 }
  0x13   :  { %677 = shalt.err (!%p674_p7)
}
  0x14   :  { %s753_s23 = smov 32   ;;  %s754_s24 = smov 2  }
  0x15   :  { %24 = dma.hbm_to_vmem [thread:$0]  %s997_s0, 32, %s19_s13, [#allocation3], %s753_s23, %s753_s23, %s754_s24  }
  0x16   :  { %29 = vsyncadd [#allocation6], 768  ;;  %s755_s27 = smov [#allocation5]   ;;  %s678_s4 = scalar_lea.hbm %s998_s1, 256 }
  0x17   :  { %s30_s28 = sshll.u32 %s755_s27, 4  ;;  %p679_p8 = scmp.ne.s32.totalorder %s998_s1, %s678_s4  ;;  %s31_s28 = int_to_ptr.vmem [resolvable:$true] %s30_s28 }
  0x18   :  { %p682_p9 = scmp.lt.u32.totalorder %s678_s4, %s998_s1 }
  0x1a   :  { %p684_p10 = pnand %p682_p9, %p679_p8 }
  0x1c   :  { %687 = shalt.err (!%p684_p10)
}
  0x1d   :  { %s688_s9 = scalar_lea.vmem %s31_s28, 256  ;;  %s692_s0 = scalar_lea.vmem %s31_s28, 1024 }
  0x1e   :  { %p689_p11 = scmp.ne.s32.totalorder %s31_s28, %s688_s9  ;;  %p693_p12 = scmp.lt.s32.totalorder %s31_s28, %s31_s28 }
  0x1f   :  { %p694_p13 = scmp.lt.s32.totalorder %s692_s0, %s688_s9 }
  0x21   :  { %p695_p0 = por %p694_p13, %p693_p12 }
  0x23   :  { %p696_p1 = pnand %p695_p0, %p689_p11 }
  0x25   :  { %699 = shalt.err (!%p696_p1)
}
  0x26   :  { %s756_s10 = smov 128   ;;  %s757_s11 = smov 8  }
  0x27   :  { %36 = dma.hbm_to_vmem [thread:$0]  %s998_s1, 256, %s31_s28, [#allocation6], %s756_s10, %s756_s10, %s757_s11  }
  0x28   :  { %744 = dma.done.wait [#allocation3], 128  }
  0x29   :  { %745 = vsyncadd [#allocation3], 4294967168 }
  0x2a   :  { %746 = dma.done.wait [#allocation6], 1024  }
  0x2b   :  { %747 = vsyncadd [#allocation6], 4294966272  ;;  %v57_v0 = vlaneseq  ;;  %v758_v1 = vmov 1966171168   ;;  %v43_v8 = vld [vmem:[#allocation2] sm:$0xff]  ;;  %v818_v15 = vld [vmem:[#allocation5] sm:$0xff] }
  0x2c   :  { %v55_v2 = vunpack.c.l.s4 %v758_v1  ;;  %v53_v11 = vcombine.high %v43_v8, %v43_v8  ;;  %vm150_vm0 = vcmask 261120   ;;  %v821_v20 = vld [vmem:[#allocation5 + $0x10] sm:$0xff]  ;;  %v823_v21 = vld [vmem:[#allocation5 + $0x8] sm:$0xff]  ;;  %v828_v27 = vld [vmem:[#allocation5 + $0x20] sm:$0xff]  ;;  %vm217_vm1 = vcmask 1041409  }
  0x2d   :  { %v809_v3 = vshrl.u32 %v57_v0, 7  ;;  %v184_v4 = vand.u32 127, %v57_v0  ;;  %v830_v28 = vld [vmem:[#allocation5 + $0x18] sm:$0xff]  ;;  %v838_v37 = vld [vmem:[#allocation5 + $0x28] sm:$0xff]  ;;  %v845_v44 = vld [vmem:[#allocation5 + $0x30] sm:$0xff]  ;;  %vm219_vm2 = vcmask 1042434  }
  0x2e   :  { %v56_v5 = vunpack.c.0.s8 %v55_v2  ;;  %v850_v48 = vld [vmem:[#allocation5 + $0x38] sm:$0xff]  ;;  %vm221_vm3 = vcmask 1043459   ;;  %vm223_vm4 = vcmask 1044484   ;;  %vm225_vm5 = vcmask 1045509  }
  0x2f   :  { %v812_v6 = vsub.s32 %v184_v4, %v809_v3  ;;  %v816_v10 = vsub.s32 0, %v809_v3  ;;  %vm227_vm6 = vcmask 1046534   ;;  %vm229_vm7 = vcmask 1047559  }
  0x30   :  { %v59_v7 = vsub.s32 %v56_v5, %v809_v3  ;;  %vm232_vm8 = vcmask 64512  }
  0x32   :  { %v60_v9 = vrot.slane %v43_v8, %v59_v7  ;;  %v67_v14 = vrot.slane %v53_v11, %v59_v7 }
  0x34   :  { %v76_v12 = vrot.slane %v60_v9, %v59_v7  ;;  %v68_v13 = vcombine.high %v60_v9, %v60_v9  ;;  %v83_v19 = vrot.slane %v67_v14, %v59_v7  ;;  %v69_v22 = vcombine.high %v67_v14, %v67_v14 }
  0x36   :  { %v105_v16 = vrot.slane %v76_v12, %v816_v10  ;;  %v98_v17 = vcombine.high %v76_v12, %v76_v12  ;;  %v90_v18 = vrot.slane %v68_v13, %v59_v7  ;;  %v121_v29 = vrot.slane %v83_v19, %v816_v10 }
  0x37   :  { %v97_v30 = vrot.slane %v69_v22, %v59_v7  ;;  %v99_v31 = vcombine.high %v83_v19, %v83_v19  ;;  %v759_v19 = vmov 0   ;;  %v243_v22 = vsub.s32 1, %v809_v3 }
  0x38   :  { %v142_v23 = vmul.f32 %v105_v16, %v818_v15  ;;  %v113_v24 = vrot.slane %v98_v17, %v816_v10  ;;  %v109_v25 = vrot.slane %v90_v18, %v816_v10  ;;  %v100_v26 = vcombine.high %v90_v18, %v90_v18  ;;  %636 = vset.pattern.permute.xlu0 %v759_v19 }
  0x39   :  { %v146_v36 = vmul.f32 %v121_v29, %v828_v27  ;;  %v125_v38 = vrot.slane %v97_v30, %v816_v10  ;;  %v101_v39 = vcombine.high %v97_v30, %v97_v30  ;;  %v129_v43 = vrot.slane %v99_v31, %v816_v10  ;;  %635 = vset.pattern.permute.xlu1 %v759_v19 }
  0x3a   :  { %v151_v32 = vsel %vm150_vm0, %v142_v23, 0.0  ;;  %v144_v33 = vmul.f32 %v113_v24, %v821_v20  ;;  %v143_v34 = vmul.f32 %v109_v25, %v823_v21  ;;  %v117_v35 = vrot.slane %v100_v26, %v816_v10 }
  0x3b   :  { %152 = vadd.xlane.f32.xlu0 %v151_v32  ;;  %v147_v46 = vmul.f32 %v125_v38, %v838_v37  ;;  %v133_v47 = vrot.slane %v101_v39, %v816_v10  ;;  %v163_v49 = vsel %vm150_vm0, %v146_v36, 0.0  ;;  %v148_v50 = vmul.f32 %v129_v43, %v845_v44 }
  0x3c   :  { %v157_v40 = vsel %vm150_vm0, %v144_v33, 0.0  ;;  %v154_v41 = vsel %vm150_vm0, %v143_v34, 0.0  ;;  %v145_v42 = vmul.f32 %v117_v35, %v830_v28  ;;  %v247_v23 = vsub.s32 2, %v809_v3 }
  0x3d   :  { %158 = vadd.xlane.f32.xlu1 %v157_v40  ;;  %v166_v51 = vsel %vm150_vm0, %v147_v46, 0.0  ;;  %v149_v52 = vmul.f32 %v133_v47, %v850_v48  ;;  %v169_v53 = vsel %vm150_vm0, %v148_v50, 0.0  ;;  %v251_v24 = vsub.s32 3, %v809_v3 }
  0x3e   :  { %v160_v45 = vsel %vm150_vm0, %v145_v42, 0.0  ;;  %v255_v31 = vsub.s32 4, %v809_v3  ;;  %v259_v39 = vsub.s32 5, %v809_v3  ;;  %v263_v43 = vsub.s32 6, %v809_v3 }
  0x3f   :  { %155 = vadd.xlane.f32.xlu0 %v154_v41  ;;  %v172_v54 = vsel %vm150_vm0, %v149_v52, 0.0 }
  0x41   :  { %161 = vadd.xlane.f32.xlu1 %v160_v45 }
  0x43   :  { %164 = vadd.xlane.f32.xlu0 %v163_v49  ;;  %v267_v49 = vsub.s32 7, %v809_v3 }
  0x45   :  { %167 = vadd.xlane.f32.xlu1 %v166_v51 }
  0x47   :  { %170 = vadd.xlane.f32.xlu0 %v169_v53 }
  0x49   :  { %173 = vadd.xlane.f32.xlu1 %v172_v54 }
  0xc8   :  { %v153_v55 = vpop.xlane.xlu0 %152 }
  0xc9   :  { %v188_v58 = vrot.slane %v153_v55, %v812_v6 }
  0xca   :  { %v159_v56 = vpop.xlane.xlu1 %158 }
  0xcb   :  { %v196_v60 = vrot.slane %v159_v56, %v812_v6 }
  0xcc   :  { %v156_v57 = vpop.xlane.xlu0 %155 }
  0xcd   :  { %v192_v59 = vrot.slane %v156_v57, %v812_v6 }
  0xce   :  { %v162_v61 = vpop.xlane.xlu1 %161 }
  0xcf   :  { %v218_v62 = vsel %vm217_vm1, %v192_v59, %v188_v58  ;;  %v200_v63 = vrot.slane %v162_v61, %v812_v6 }
  0xd0   :  { %v220_v0 = vsel %vm219_vm2, %v196_v60, %v218_v62  ;;  %v165_v1 = vpop.xlane.xlu0 %164 }
  0xd1   :  { %v222_v2 = vsel %vm221_vm3, %v200_v63, %v220_v0  ;;  %v204_v4 = vrot.slane %v165_v1, %v812_v6 }
  0xd2   :  { %v168_v5 = vpop.xlane.xlu1 %167 }
  0xd3   :  { %v224_v7 = vsel %vm223_vm4, %v204_v4, %v222_v2  ;;  %v208_v8 = vrot.slane %v168_v5, %v812_v6 }
  0xd4   :  { %v171_v9 = vpop.xlane.xlu0 %170 }
  0xd5   :  { %v212_v11 = vrot.slane %v171_v9, %v812_v6  ;;  %v226_v12 = vsel %vm225_vm5, %v208_v8, %v224_v7 }
  0xd6   :  { %v174_v13 = vpop.xlane.xlu1 %173 }
  0xd7   :  { %v216_v14 = vrot.slane %v174_v13, %v812_v6  ;;  %v228_v16 = vsel %vm227_vm6, %v212_v11, %v226_v12 }
  0xd9   :  { %v230_v17 = vsel %vm229_vm7, %v216_v14, %v228_v16 }
  0xda   :  { %v233_v18 = vsel %vm232_vm8, %v230_v17, -inf }
  0xdb   :  { %234 = vmax.xlane.f32.xlu0 %v233_v18 }
 0x168   :  { %v235_v25 = vpop.xlane.xlu0 %234 }
 0x169   :  { %v240_v26 = vrot.slane %v235_v25, %v816_v10  ;;  %v244_v29 = vrot.slane %v235_v25, %v243_v22  ;;  %v248_v30 = vrot.slane %v235_v25, %v247_v23  ;;  %v252_v32 = vrot.slane %v235_v25, %v251_v24 }
 0x16a   :  { %v256_v40 = vrot.slane %v235_v25, %v255_v31  ;;  %v260_v45 = vrot.slane %v235_v25, %v259_v39  ;;  %v264_v50 = vrot.slane %v235_v25, %v263_v43 }
 0x16b   :  { %v277_v33 = vsub.f32 %v153_v55, %v240_v26  ;;  %v278_v34 = vsub.f32 %v156_v57, %v244_v29  ;;  %v279_v35 = vsub.f32 %v159_v56, %v248_v30  ;;  %v280_v41 = vsub.f32 %v162_v61, %v252_v32 }
 0x16c   :  { %v281_v46 = vsub.f32 %v165_v1, %v256_v40  ;;  %v282_v51 = vsub.f32 %v168_v5, %v260_v45  ;;  %v268_v55 = vrot.slane %v235_v25, %v267_v49  ;;  %v283_v56 = vsub.f32 %v171_v9, %v264_v50 }
 0x16d   :  { %v285_v36 = vmul.f32 1.442695, %v277_v33  ;;  %v287_v38 = vmul.f32 1.442695, %v278_v34  ;;  %v289_v42 = vmul.f32 1.442695, %v279_v35 }
 0x16e   :  { %v291_v47 = vmul.f32 1.442695, %v280_v41  ;;  %v293_v52 = vmul.f32 1.442695, %v281_v46  ;;  %v295_v57 = vmul.f32 1.442695, %v282_v51  ;;  %v284_v59 = vsub.f32 %v174_v13, %v268_v55 }
 0x16f   :  { %638 = vpow2.f32 %v285_v36  ;;  %v297_v60 = vmul.f32 1.442695, %v283_v56 }
 0x170   :  { %640 = vpow2.f32 %v287_v38  ;;  %v299_v62 = vmul.f32 1.442695, %v284_v59 }
 0x171   :  { %642 = vpow2.f32 %v289_v42 }
 0x172   :  { %644 = vpow2.f32 %v291_v47 }
 0x173   :  { %646 = vpow2.f32 %v293_v52 }
 0x174   :  { %648 = vpow2.f32 %v295_v57 }
 0x175   :  { %650 = vpow2.f32 %v297_v60 }
 0x176   :  { %652 = vpow2.f32 %v299_v62 }
 0x179   :  { %v639_v53 = vpop.eup %638 }
 0x17a   :  { %v641_v54 = vpop.eup %640  ;;  %310 = vperm.xlu1 %635, %v639_v53  }
 0x17b   :  { %313 = vperm.xlu0 %636, %v641_v54   ;;  %v643_v58 = vpop.eup %642 }
 0x17c   :  { %v645_v61 = vpop.eup %644 }
 0x17d   :  { %v647_v63 = vpop.eup %646 }
 0x17e   :  { %316 = vperm.xlu1 %635, %v643_v58   ;;  %v649_v0 = vpop.eup %648 }
 0x17f   :  { %v651_v1 = vpop.eup %650 }
 0x180   :  { %v653_v2 = vpop.eup %652 }
 0x182   :  { %319 = vperm.xlu1 %635, %v645_v61  }
 0x186   :  { %322 = vperm.xlu1 %635, %v647_v63  }
 0x18a   :  { %325 = vperm.xlu1 %635, %v649_v0  }
 0x18e   :  { %328 = vperm.xlu1 %635, %v651_v1  }
 0x192   :  { %331 = vperm.xlu1 %635, %v653_v2  }
 0x1f9   :  { %v311_v4 = vpop.permute.xlu1 %310 }
 0x1fa   :  { %v314_v9 = vpop.permute.xlu0 %313  ;;  %v336_v13 = vrot.slane %v311_v4, %v812_v6 }
 0x1fb   :  { %v340_v12 = vrot.slane %v314_v9, %v812_v6 }
 0x1fd   :  { %v317_v5 = vpop.permute.xlu1 %316  ;;  %v365_v19 = vsel %vm217_vm1, %v340_v12, %v336_v13 }
 0x1fe   :  { %v344_v14 = vrot.slane %v317_v5, %v812_v6 }
 0x200   :  { %v366_v26 = vsel %vm219_vm2, %v344_v14, %v365_v19 }
 0x201   :  { %v320_v7 = vpop.permute.xlu1 %319 }
 0x202   :  { %v348_v16 = vrot.slane %v320_v7, %v812_v6 }
 0x204   :  { %v367_v30 = vsel %vm221_vm3, %v348_v16, %v366_v26 }
 0x205   :  { %v323_v8 = vpop.permute.xlu1 %322 }
 0x206   :  { %v352_v17 = vrot.slane %v323_v8, %v812_v6 }
 0x208   :  { %v368_v32 = vsel %vm223_vm4, %v352_v17, %v367_v30 }
 0x209   :  { %v326_v11 = vpop.permute.xlu1 %325 }
 0x20a   :  { %v356_v25 = vrot.slane %v326_v11, %v812_v6 }
 0x20c   :  { %v369_v34 = vsel %vm225_vm5, %v356_v25, %v368_v32 }
 0x20d   :  { %v329_v18 = vpop.permute.xlu1 %328 }
 0x20e   :  { %v360_v29 = vrot.slane %v329_v18, %v812_v6 }
 0x210   :  { %v370_v36 = vsel %vm227_vm6, %v360_v29, %v369_v34 }
 0x211   :  { %v332_v33 = vpop.permute.xlu1 %331 }
 0x212   :  { %v364_v35 = vrot.slane %v332_v33, %v812_v6 }
 0x214   :  { %v371_v38 = vsel %vm229_vm7, %v364_v35, %v370_v36 }
 0x215   :  { %v373_v40 = vsel %vm232_vm8, %v371_v38, 0.0 }
 0x216   :  { %374 = vadd.xlane.f32.xlu1 %v373_v40 }
 0x2a3   :  { %v375_v41 = vpop.xlane.xlu1 %374 }
 0x2a4   :  { %654 = vrcp.f32 %v375_v41 }
 0x2ae   :  { %v655_v42 = vpop.eup %654 }
 0x2af   :  { %v377_v45 = vmul.f32 %v655_v42, %v375_v41 }
 0x2b1   :  { %v378_v46 = vsub.f32 2.0, %v377_v45 }
 0x2b3   :  { %v379_v47 = vmul.f32 %v655_v42, %v378_v46 }
 0x2b5   :  { %v384_v50 = vrot.slane %v379_v47, %v816_v10  ;;  %v388_v52 = vrot.slane %v379_v47, %v243_v22  ;;  %v392_v56 = vrot.slane %v379_v47, %v247_v23  ;;  %v396_v59 = vrot.slane %v379_v47, %v251_v24 }
 0x2b6   :  { %v400_v62 = vrot.slane %v379_v47, %v255_v31  ;;  %v404_v22 = vrot.slane %v379_v47, %v259_v39  ;;  %v408_v23 = vrot.slane %v379_v47, %v263_v43  ;;  %v412_v24 = vrot.slane %v379_v47, %v267_v49 }
 0x2b7   :  { %v421_v51 = vmul.f32 %v639_v53, %v384_v50  ;;  %v422_v55 = vmul.f32 %v641_v54, %v388_v52  ;;  %v423_v57 = vmul.f32 %v643_v58, %v392_v56  ;;  %v424_v60 = vmul.f32 %v645_v61, %v396_v59 }
 0x2b8   :  { %v425_v10 = vmul.f32 %v647_v63, %v400_v62  ;;  %v426_v53 = vmul.f32 %v649_v0, %v404_v22  ;;  %v427_v54 = vmul.f32 %v651_v1, %v408_v23  ;;  %v428_v58 = vmul.f32 %v653_v2, %v412_v24 }
 0x2b9   :  { %431 = vperm.xlu0 %636, %v421_v51  }
 0x2bd   :  { %436 = vperm.xlu0 %636, %v422_v55  }
 0x2c1   :  { %441 = vperm.xlu0 %636, %v423_v57  }
 0x2c5   :  { %446 = vperm.xlu0 %636, %v424_v60  }
 0x2c9   :  { %451 = vperm.xlu0 %636, %v425_v10  }
 0x2cd   :  { %456 = vperm.xlu0 %636, %v426_v53  }
 0x2d1   :  { %461 = vperm.xlu0 %636, %v427_v54  }
 0x2d5   :  { %466 = vperm.xlu0 %636, %v428_v58  }
 0x338   :  { %v432_v61 = vpop.permute.xlu0 %431 }
 0x339   :  { %v469_v4 = vmul.f32 %v432_v61, %v818_v15  ;;  %v553_v25 = vrot.slane %v432_v61, %v812_v6 }
 0x33b   :  { %v477_v43 = vsel %vm150_vm0, %v469_v4, 0.0 }
 0x33c   :  { %v437_v31 = vpop.permute.xlu0 %436  ;;  %v478_v7 = vrot.slane %v477_v43, 4 }
 0x33d   :  { %v470_v63 = vmul.f32 %v437_v31, %v823_v21  ;;  %v557_v19 = vrot.slane %v437_v31, %v812_v6 }
 0x33f   :  { %v484_v5 = vsel %vm150_vm0, %v470_v63, 0.0  ;;  %v582_v41 = vsel %vm217_vm1, %v557_v19, %v553_v25 }
 0x340   :  { %v442_v39 = vpop.permute.xlu0 %441  ;;  %v485_v2 = vrot.slane %v484_v5, 4 }
 0x341   :  { %v471_v0 = vmul.f32 %v442_v39, %v821_v20  ;;  %v479_v20 = vadd.f32 %v478_v7, %v477_v43  ;;  %v561_v29 = vrot.slane %v442_v39, %v812_v6 }
 0x342   :  { %v486_v12 = vadd.f32 %v485_v2, %v484_v5 }
 0x343   :  { %v491_v1 = vsel %vm150_vm0, %v471_v0, 0.0  ;;  %v480_v32 = vrot.slane %v479_v20, 2  ;;  %v583_v47 = vsel %vm219_vm2, %v561_v29, %v582_v41 }
 0x344   :  { %v447_v3 = vpop.permute.xlu0 %446  ;;  %v492_v8 = vrot.slane %v491_v1, 4  ;;  %v487_v26 = vrot.slane %v486_v12, 2 }
 0x345   :  { %v472_v49 = vmul.f32 %v447_v3, %v830_v28  ;;  %v565_v33 = vrot.slane %v447_v3, %v812_v6  ;;  %v481_v52 = vadd.f32 %v480_v32, %v479_v20 }
 0x346   :  { %v493_v13 = vadd.f32 %v492_v8, %v491_v1  ;;  %v488_v46 = vadd.f32 %v487_v26, %v486_v12 }
 0x347   :  { %v498_v9 = vsel %vm150_vm0, %v472_v49, 0.0  ;;  %v584_v56 = vsel %vm221_vm3, %v565_v33, %v583_v47  ;;  %v482_v0 = vrot.slane %v481_v52, 1 }
 0x348   :  { %v499_v21 = vrot.slane %v498_v9, 4  ;;  %v452_v11 = vpop.permute.xlu0 %451  ;;  %v489_v24 = vrot.slane %v488_v46, 1 }
 0x349   :  { %v473_v15 = vmul.f32 %v452_v11, %v828_v27  ;;  %v494_v27 = vrot.slane %v493_v13, 2  ;;  %v569_v36 = vrot.slane %v452_v11, %v812_v6  ;;  %v483_v8 = vadd.f32 %v482_v0, %v481_v52 }
 0x34a   :  { %v500_v16 = vadd.f32 %v499_v21, %v498_v9 }
 0x34b   :  { %v505_v14 = vsel %vm150_vm0, %v473_v15, 0.0  ;;  %v495_v55 = vadd.f32 %v494_v27, %v493_v13  ;;  %v585_v60 = vsel %vm223_vm4, %v569_v36, %v584_v56 }
 0x34c   :  { %v506_v17 = vrot.slane %v505_v14, 4  ;;  %v457_v18 = vpop.permute.xlu0 %456  ;;  %v501_v35 = vrot.slane %v500_v16, 2 }
 0x34d   :  { %v474_v28 = vmul.f32 %v457_v18, %v838_v37  ;;  %v573_v42 = vrot.slane %v457_v18, %v812_v6  ;;  %v496_v63 = vrot.slane %v495_v55, 1 }
 0x34e   :  { %v507_v30 = vadd.f32 %v506_v17, %v505_v14  ;;  %v502_v59 = vadd.f32 %v501_v35, %v500_v16 }
 0x34f   :  { %v512_v34 = vsel %vm150_vm0, %v474_v28, 0.0  ;;  %v497_v7 = vadd.f32 %v496_v63, %v495_v55 }
 0x350   :  { %v513_v38 = vrot.slane %v512_v34, 4  ;;  %v462_v40 = vpop.permute.xlu0 %461  ;;  %v508_v37 = vrot.slane %v507_v30, 2  ;;  %v503_v5 = vrot.slane %v502_v59, 1 }
 0x351   :  { %v475_v45 = vmul.f32 %v462_v40, %v845_v44  ;;  %v577_v51 = vrot.slane %v462_v40, %v812_v6  ;;  %v586_v44 = vsel %vm225_vm5, %v573_v42, %v585_v60 }
 0x352   :  { %v514_v50 = vadd.f32 %v513_v38, %v512_v34  ;;  %v509_v53 = vadd.f32 %v508_v37, %v507_v30  ;;  %v504_v9 = vadd.f32 %v503_v5, %v502_v59 }
 0x353   :  { %v519_v57 = vsel %vm150_vm0, %v475_v45, 0.0  ;;  %v587_v31 = vsel %vm227_vm6, %v577_v51, %v586_v44 }
 0x354   :  { %v515_v62 = vrot.slane %v514_v50, 2  ;;  %v520_v10 = vrot.slane %v519_v57, 4  ;;  %v467_v22 = vpop.permute.xlu0 %466  ;;  %v510_v3 = vrot.slane %v509_v53, 1 }
 0x355   :  { %v476_v23 = vmul.f32 %v467_v22, %v850_v48  ;;  %v581_v54 = vrot.slane %v467_v22, %v812_v6  ;;  %v490_v48 = vadd.f32 %v489_v24, %v488_v46 }
 0x356   :  { %v516_v58 = vadd.f32 %v515_v62, %v514_v50  ;;  %v521_v61 = vadd.f32 %v520_v10, %v519_v57  ;;  %v511_v15 = vadd.f32 %v510_v3, %v509_v53 }
 0x357   :  { %v526_v4 = vsel %vm150_vm0, %v476_v23, 0.0  ;;  %v588_v39 = vsel %vm229_vm7, %v581_v54, %v587_v31  ;;  %v541_v12 = vsel %vm217_vm1, %v490_v48, %v483_v8 }
 0x358   :  { %v522_v43 = vrot.slane %v521_v61, 2  ;;  %v527_v1 = vrot.slane %v526_v4, 4  ;;  %590 = vst.msk [vmem:[#allocation8] sm:$0xff] %vm232_vm8, %v588_v39  ;;  %v517_v49 = vrot.slane %v516_v58, 1  ;;  %v542_v14 = vsel %vm219_vm2, %v497_v7, %v541_v12 }
 0x359   :  { %v543_v17 = vsel %vm221_vm3, %v504_v9, %v542_v14 }
 0x35a   :  { %v523_v6 = vadd.f32 %v522_v43, %v521_v61  ;;  %v528_v2 = vadd.f32 %v527_v1, %v526_v4  ;;  %v518_v20 = vadd.f32 %v517_v49, %v516_v58  ;;  %v544_v19 = vsel %vm223_vm4, %v511_v15, %v543_v17 }
 0x35c   :  { %v524_v21 = vrot.slane %v523_v6, 1  ;;  %v529_v11 = vrot.slane %v528_v2, 2  ;;  %v545_v28 = vsel %vm225_vm5, %v518_v20, %v544_v19 }
 0x35e   :  { %v530_v13 = vadd.f32 %v529_v11, %v528_v2  ;;  %v525_v16 = vadd.f32 %v524_v21, %v523_v6 }
 0x360   :  { %v531_v18 = vrot.slane %v530_v13, 1  ;;  %v546_v26 = vsel %vm227_vm6, %v525_v16, %v545_v28 }
 0x362   :  { %v532_v25 = vadd.f32 %v531_v18, %v530_v13 }
 0x364   :  { %v547_v29 = vsel %vm229_vm7, %v532_v25, %v546_v26 }
 0x365   :  { %549 = vst.msk [vmem:[#allocation7] sm:$0xff] %vm150_vm0, %v547_v29 }
 0x366   :  { %595 = vsyncadd [#allocation4], 96  ;;  %s760_s1 = smov [#allocation7]  }
 0x367   :  { %s596_s14 = sshll.u32 %s760_s1, 4  ;;  %s597_s14 = int_to_ptr.vmem [resolvable:$true] %s596_s14 }
 0x368   :  { %s700_s15 = scalar_lea.vmem %s597_s14, 32  ;;  %s704_s16 = scalar_lea.vmem %s597_s14, 128 }
 0x369   :  { %p701_p2 = scmp.ne.s32.totalorder %s597_s14, %s700_s15  ;;  %p705_p3 = scmp.lt.s32.totalorder %s597_s14, %s597_s14 }
 0x36a   :  { %p706_p4 = scmp.lt.s32.totalorder %s704_s16, %s700_s15 }
 0x36c   :  { %p707_p5 = por %p706_p4, %p705_p3 }
 0x36e   :  { %p708_p6 = pnand %p707_p5, %p701_p2 }
 0x370   :  { %711 = shalt.err (!%p708_p6)
}
 0x371   :  { %s712_s19 = scalar_lea.hbm %s999_s2, 32 }
 0x372   :  { %p713_p7 = scmp.ne.s32.totalorder %s999_s2, %s712_s19  ;;  %p716_p8 = scmp.lt.u32.totalorder %s712_s19, %s999_s2 }
 0x374   :  { %p718_p9 = pnand %p716_p8, %p713_p7 }
 0x376   :  { %721 = shalt.err (!%p718_p9)
}
 0x377   :  { %602 = dma.vmem_to_hbm [thread:$0]  %s597_s14, 32, %s999_s2, [#allocation4], %s753_s23, %s753_s23, %s754_s24  }
 0x378   :  { %607 = vsyncadd [#allocation9], 96  ;;  %s761_s28 = smov [#allocation8]  }
 0x379   :  { %s608_s29 = sshll.u32 %s761_s28, 4  ;;  %s609_s29 = int_to_ptr.vmem [resolvable:$true] %s608_s29 }
 0x37a   :  { %s722_s30 = scalar_lea.vmem %s609_s29, 32  ;;  %s726_s4 = scalar_lea.vmem %s609_s29, 128 }
 0x37b   :  { %p723_p10 = scmp.ne.s32.totalorder %s609_s29, %s722_s30  ;;  %p727_p11 = scmp.lt.s32.totalorder %s609_s29, %s609_s29 }
 0x37c   :  { %p728_p12 = scmp.lt.s32.totalorder %s726_s4, %s722_s30 }
 0x37e   :  { %p729_p13 = por %p728_p12, %p727_p11 }
 0x380   :  { %p730_p0 = pnand %p729_p13, %p723_p10 }
 0x382   :  { %733 = shalt.err (!%p730_p0)
}
 0x383   :  { %s734_s7 = scalar_lea.hbm %s1000_s3, 32 }
 0x384   :  { %p735_p1 = scmp.ne.s32.totalorder %s1000_s3, %s734_s7  ;;  %p738_p2 = scmp.lt.u32.totalorder %s734_s7, %s1000_s3 }
 0x386   :  { %p740_p3 = pnand %p738_p2, %p735_p1 }
 0x388   :  { %743 = shalt.err (!%p740_p3)
}
 0x389   :  { %614 = dma.vmem_to_hbm [thread:$0]  %s609_s29, 32, %s1000_s3, [#allocation9], %s753_s23, %s753_s23, %s754_s24  }
 0x38a   :  { %748 = dma.done.wait [#allocation4], 128  }
 0x38b   :  { %749 = vsyncadd [#allocation4], 4294967168 }
 0x38c   :  { %750 = dma.done.wait [#allocation9], 128  }
 0x38d   :  { %751 = vsyncadd [#allocation9], 4294967168 }
 0x38e   :  { %621 = vsyncpa [#allocation3], 1 }
 0x38f   :  { %622 = vsyncpa [#allocation6], 1 }
 0x390   :  { %623 = vsyncpa [#allocation4], 1 }
 0x391   :  { %624 = vsyncpa [#allocation9], 1 }

</bundles_post_ra>
